<compile_context>
chip_gen: v6e
topology: v6e:2x2x1
jax: 0.10.0
libtpu: 0.0.40
codegen_flags: <defaults>
</compile_context>

<pallas_src>
import math
import functools

import jax
import jax.numpy as jnp
from jax.experimental import pallas as pl
from jax.experimental.pallas import tpu as pltpu


# ---------------------------------------------------------------------------
# Tiling configuration
# ---------------------------------------------------------------------------

def _sublane(dtype) -> int:
    """Sublane alignment requirement for a dtype (8 f32 / 16 bf16 / 32 int8)."""
    return {4: 8, 2: 16, 1: 32}.get(jnp.dtype(dtype).itemsize, 8)


def _pick_tile_budget_bytes() -> int:
    """Per-buffer VMEM tile budget, generation-aware with a safe fallback.

    2 MiB works everywhere (x/pe/out double-buffered ~= 12 MiB < v5e's 16 MiB
    scoped-VMEM default).  v6e/v7x have a 32 MiB scoped default and higher HBM
    bandwidth (per-step overhead is proportionally costlier), so bump to 4 MiB.
    """
    budget = 2 << 20
    try:
        name = str(pltpu.get_tpu_info()).lower()
        if any(tag in name for tag in ("v6", "v7", "6e", "7x")):
            budget = 4 << 20
    except Exception:
        pass
    return budget


_TILE_BUDGET_BYTES = _pick_tile_budget_bytes()


# ---------------------------------------------------------------------------
# Kernel
# ---------------------------------------------------------------------------

def _pe_add_kernel(x_ref, pe_ref, o_ref):
    # x_ref / o_ref: (block_b, tile_r, D); pe_ref: (tile_r, D).
    # pe is shared across the batch-block; the leading-dim broadcast is just a
    # vreg re-read and the dtype cast runs on the VPU -- both free in an
    # HBM-bound kernel.
    pe = pe_ref[...].astype(x_ref.dtype)
    o_ref[...] = x_ref[...] + pe[None, :, :]


# ---------------------------------------------------------------------------
# pallas_call wrapper
# ---------------------------------------------------------------------------

def _pe_add(x3: jnp.ndarray, pe2: jnp.ndarray) -> jnp.ndarray:
    """x3: (B, S, D); pe2: (max_len, D) with max_len >= S.  Returns x3 + pe2[:S]."""
    B, S, D = x3.shape
    assert pe2.shape[0] >= S, "sequence length exceeds positional-encoding table"
    assert pe2.shape[1] == D, "d_model mismatch between x and pe table"

    itemsize = jnp.dtype(x3.dtype).itemsize
    budget = _TILE_BUDGET_BYTES
    sub = max(_sublane(x3.dtype), _sublane(pe2.dtype))
    plane_bytes = S * D * itemsize            # one (S, D) plane of x

    # --- choose the block shape ------------------------------------------------
    if plane_bytes <= budget:
        # Whole sequence per block; pack as many batches per grid step as fit
        # so each step moves ~budget bytes.
        tile_r = S
        block_b = min(B, max(1, budget // max(plane_bytes, 1)))
    elif S < sub:
        # Degenerate corner (tiny S, huge D): one full-sequence plane per step.
        tile_r = S
        block_b = 1
    else:
        # Row-tile inside a plane; sublane-aligned, partial last tile allowed.
        bytes_per_row = D * itemsize
        tile_r = max(sub, (budget // bytes_per_row) // sub * sub)
        tile_r = min(tile_r, (S // sub) * sub)
        block_b = 1

    num_r = pl.cdiv(S, tile_r)
    num_b = pl.cdiv(B, block_b)

    # pe's block row dim must be sublane-aligned or equal pe's full row extent.
    # If neither holds (e.g. ragged small S), take a tiny wrapper slice so the
    # block covers the sliced table's full extent.
    if tile_r % sub == 0 or tile_r == pe2.shape[0]:
        pe_arg = pe2
    else:
        pe_arg = pe2[:S]

    # Grid: row tiles OUTER, batch INNER.  The pe index_map ignores the batch
    # axis, so its tile is DMA'd once per row tile (re-DMA skipped across the
    # consecutive inner batch steps).  Both axes are independent writes ->
    # "parallel" so v7x's two TensorCores can shard the grid.
    grid = (num_r, num_b)

    cp_kwargs = dict(dimension_semantics=("parallel", "parallel"))
    if budget > (2 << 20):
        # Headroom for the 4 MiB tiles; safe on all generations (<= physical
        # VMEM everywhere, including v7x's 64 MiB).
        cp_kwargs["vmem_limit_bytes"] = 40 << 20

    return pl.pallas_call(
        _pe_add_kernel,
        out_shape=jax.ShapeDtypeStruct((B, S, D), x3.dtype),
        grid_spec=pltpu.PrefetchScalarGridSpec(
            num_scalar_prefetch=0,
            grid=grid,
            in_specs=[
                pl.BlockSpec((block_b, tile_r, D), lambda r, b: (b, r, 0)),
                pl.BlockSpec((tile_r, D), lambda r, b: (r, 0)),
            ],
            out_specs=pl.BlockSpec((block_b, tile_r, D), lambda r, b: (b, r, 0)),
        ),
        compiler_params=pltpu.CompilerParams(**cp_kwargs),
    )(x3, pe_arg)


# ---------------------------------------------------------------------------
# Module-equivalent glue
# ---------------------------------------------------------------------------

def make_pe_table(d_model: int, max_len: int = 5000,
                  dtype=jnp.float32) -> jnp.ndarray:
    """(max_len, d_model) sin/cos table (matches the PyTorch init), stored in
    `dtype` so the kernel streams a single dtype without a per-call cast pass."""
    position = jnp.arange(0, max_len, dtype=jnp.float32)[:, None]          # (L, 1)
    div_term = jnp.exp(
        jnp.arange(0, d_model, 2, dtype=jnp.float32) * -(math.log(10000.0) / d_model)
    )                                                                       # (D/2,)
    args = position * div_term                                              # (L, D/2)
    pe = jnp.zeros((max_len, d_model), dtype=jnp.float32)
    pe = pe.at[:, 0::2].set(jnp.sin(args))
    pe = pe.at[:, 1::2].set(jnp.cos(args))
    return pe.astype(dtype)


@functools.partial(jax.jit, static_argnames=("dropout_p",))
def positional_encoding_forward(x: jnp.ndarray, pe: jnp.ndarray,
                                dropout_p: float = 0.0) -> jnp.ndarray:
    """out = dropout(x + pe[:S]);  x: (B, S, D), pe: (max_len, D)."""
    # Eval-mode dropout == identity (PyTorch nn.Dropout in eval()).
    # TODO(synk): training-mode dropout (pltpu.prng_* Bernoulli mask + 1/(1-p))
    # not implemented.
    del dropout_p
    return _pe_add(x, pe)


# ---------------------------------------------------------------------------
# Demo / self-check
# ---------------------------------------------------------------------------

if __name__ == "__main__":
    key = jax.random.PRNGKey(0)
    ks = jax.random.split(key, 4)

    def run_and_check(x, pe, tag):
        out = jax.block_until_ready(positional_encoding_forward(x, pe, dropout_p=0.1))
        S = x.shape[1]
        ref = x + pe[:S].astype(x.dtype)[None, :, :]
        assert out.shape == x.shape, tag
        tol = 1e-5 if x.dtype == jnp.float32 else 2e-2
        assert bool(jnp.allclose(out, ref, atol=tol, rtol=tol)), f"mismatch: {tag}"

    # 1) Module-consistent small shape: batch=2, seq=8, d_model=32.
    pe32 = make_pe_table(d_model=32)
    x_small = jax.random.normal(ks[0], (2, 8, 32), dtype=jnp.float32)
    run_and_check(x_small, pe32, "small f32 (2,8,32)")

    # 2) Ragged sequence length (S % 8 != 0) -> wrapper slices pe to a
    #    full-extent block; everything else unchanged.
    x_ragged = jax.random.normal(ks[1], (2, 12, 32), dtype=jnp.float32)
    run_and_check(x_ragged, pe32, "ragged f32 (2,12,32)")

    # 3) Plane larger than the tile budget -> row-tiled path with a partial
    #    last row tile (exercises pl.cdiv grid + edge-block masking).
    pe256 = make_pe_table(d_model=256)
    x_big = jax.random.normal(ks[2], (2, 4608, 256), dtype=jnp.float32)
    run_and_check(x_big, pe256, "tiled f32 (2,4608,256)")

    # 4) bf16 activations against the f32 table -> in-kernel VPU cast
    #    (no wrapper cast pass); D = 64 < 128 keeps native layout.
    pe64 = make_pe_table(d_model=64)
    x_bf16 = jax.random.normal(ks[3], (2, 128, 64), dtype=jnp.bfloat16)
    run_and_check(x_bf16, pe64, "bf16 (2,128,64) vs f32 table")

    print("KERNEL_OK")
</pallas_src>

<mosaic_0001>
module attributes {stable_mosaic.version = 11 : i64} {
  func.func @_pe_add_kernel(%arg0: i32, %arg1: i32, %arg2: memref<2x8x32xf32, #tpu.memory_space<vmem>>, %arg3: memref<8x32xf32, #tpu.memory_space<vmem>>, %arg4: memref<2x8x32xf32, #tpu.memory_space<vmem>>) attributes {dimension_semantics = [#tpu.dimension_semantics<parallel>, #tpu.dimension_semantics<parallel>], iteration_bounds = array<i64: 1, 1>, scalar_prefetch = 0 : i64, scratch_operands = 0 : i64, tpu.core_type = #tpu.core_type<tc>, window_params = [{transform_indices = @transform_0, window_bounds = array<i64: 2, 8, 32>}, {transform_indices = @transform_1, window_bounds = array<i64: 8, 32>}, {transform_indices = @transform_2, window_bounds = array<i64: 2, 8, 32>}]} {
    %c0 = arith.constant 0 : index
    %c0_0 = arith.constant 0 : index
    %0 = vector.load %arg3[%c0, %c0_0] : memref<8x32xf32, #tpu.memory_space<vmem>>, vector<8x32xf32>
    %c0_1 = arith.constant 0 : index
    %c0_2 = arith.constant 0 : index
    %c0_3 = arith.constant 0 : index
    %1 = vector.load %arg2[%c0_1, %c0_2, %c0_3] : memref<2x8x32xf32, #tpu.memory_space<vmem>>, vector<2x8x32xf32>
    %2 = vector.shape_cast %0 : vector<8x32xf32> to vector<1x8x32xf32>
    %3 = vector.broadcast %2 : vector<1x8x32xf32> to vector<2x8x32xf32>
    %4 = arith.addf %1, %3 : vector<2x8x32xf32>
    %c0_4 = arith.constant 0 : index
    %c0_5 = arith.constant 0 : index
    %c0_6 = arith.constant 0 : index
    %5 = vector.load %arg4[%c0_4, %c0_5, %c0_6] : memref<2x8x32xf32, #tpu.memory_space<vmem>>, vector<2x8x32xf32>
    tpu.vector_store %arg4[%c0_4, %c0_5, %c0_6], %4 {strides = array<i32>} : memref<2x8x32xf32, #tpu.memory_space<vmem>>, vector<2x8x32xf32>,
    return
  }
  func.func @transform_0(%arg0: i32, %arg1: i32) -> (i32, i32, i32) {
    %c0_i32 = arith.constant 0 : i32
    %c0_i32_0 = arith.constant 0 : i32
    return %arg1, %arg0, %c0_i32 : i32, i32, i32
  }
  func.func @transform_1(%arg0: i32, %arg1: i32) -> (i32, i32) {
    %c0_i32 = arith.constant 0 : i32
    %c0_i32_0 = arith.constant 0 : i32
    return %arg0, %c0_i32 : i32, i32
  }
  func.func @transform_2(%arg0: i32, %arg1: i32) -> (i32, i32, i32) {
    %c0_i32 = arith.constant 0 : i32
    %c0_i32_0 = arith.constant 0 : i32
    return %arg1, %arg0, %c0_i32 : i32, i32, i32
  }
}

</mosaic_0001>

<bundles_post_ra>
// kernel: positional_encoding_forward.1
= control target key start
LH: loop header
LB: loop body
LE: loop exit
PB: predicated region body
PF: predicated region fallthrough
CT: control target
= control target key end

     0   :  { %vm17_vm0 = vcmask 261120   ;;  %s91_s0 = inlined_call_operand.vmem [shape: f32[2,8,32], index: 0, kind: input, shape index: {}]   ;;  %s92_s1 = inlined_call_operand.vmem [shape: f32[5000,32], index: 1, kind: input, shape index: {}]   ;;  %s93_s2 = inlined_call_operand.hbm [shape: f32[2,8,32], index: 2, kind: output, shape index: {}]  }
   0x1   :  { %v12_v0 = vld [vmem:[%s92_s1] sm:$0xff]  ;;  %v14_v2 = vld [vmem:[%s91_s0 + $0x8] sm:$0xff] }
   0x2   :  { %v13_v1 = vld [vmem:[%s91_s0] sm:$0xff]  ;;  %v16_v4 = vadd.f32 %v14_v2, %v12_v0 }
   0x3   :  { %v15_v3 = vadd.f32 %v13_v1, %v12_v0 }
   0x4   :  { %7 = vsyncpa [#allocation3], 0  ;;  %s61_s15 = smov [#allocation2]   ;;  %19 = vst.msk [vmem:[#allocation2 + $0x8] sm:$0xff] %vm17_vm0, %v16_v4 }
   0x5   :  { %s25_s16 = sshll.u32 %s61_s15, 4  ;;  %18 = vst.msk [vmem:[#allocation2] sm:$0xff] %vm17_vm0, %v15_v3  ;;  %s26_s16 = int_to_ptr.vmem [resolvable:$true] %s25_s16 }
   0x6   :  { %s39_s17 = scalar_lea.vmem %s26_s16, 256  ;;  %p44_p1 = scmp.lt.s32.totalorder %s26_s16, %s26_s16 }
   0x7   :  { %p40_p0 = scmp.ne.s32.totalorder %s26_s16, %s39_s17  ;;  %p45_p2 = scmp.lt.s32.totalorder %s39_s17, %s39_s17 }
   0x9   :  { %p46_p3 = por %p45_p2, %p44_p1 }
   0xb   :  { %p47_p4 = pnand %p46_p3, %p40_p0 }
   0xd   :  { %50 = shalt.err (!%p47_p4)
}
   0xe   :  { %s62_s1 = smov 128   ;;  %s63_s18 = smov 8  }
   0xf   :  { %31 = dma.vmem_to_hbm [thread:$0]  %s26_s16, 256, %s93_s2, [#allocation3], %s62_s1, %s62_s1, %s63_s18  }
  0x10   :  { %59 = dma.done.wait [#allocation3], 256  }
  0x11   :  { %60 = vsyncadd [#allocation3], 4294967040 }
  0x12   :  { %35 = vsyncpa [#allocation3], 1 }

</bundles_post_ra>
